<compile_context>
chip_gen: v7x
topology: tpu7x:2x2x1
jax: 0.10.0
libtpu: 0.0.40
codegen_flags: <defaults>
</compile_context>

<pallas_src>
import functools

import jax
import jax.numpy as jnp
from jax import lax
from jax.experimental import pallas as pl
from jax.experimental.pallas import tpu as pltpu


def _round_up(a, b):
    return (a + b - 1) // b * b


def _vmem_capacity_bytes():
    try:
        info = pltpu.get_tpu_info()
        cap = int(getattr(info, "vmem_capacity_bytes", 0))
        if cap > 0:
            return cap
    except Exception:
        pass
    return 64 * 1024 * 1024  # conservative default (v7x per-TensorCore)


def _padded_expert_dim(expert_dim):
    # <= 512: single chunk, block last dim == full array dim (no pad needed).
    # >  512: pad to a multiple of 128 so 128-aligned chunks exist.
    if expert_dim <= 512:
        return expert_dim
    return _round_up(expert_dim, 128)


def _vmem_estimate(tT, H, eC):
    """Bytes for double-buffered blocks + f32 intermediates of one step."""
    x_b = 2 * tT * H * 2                 # bf16 activations
    w_b = 3 * 2 * H * eC * 2             # w1/w3/w2 chunks, bf16, double-buffered
    cw_b = 2 * tT * 128 * 4              # (tT,1) f32 block pads to 128 lanes
    out_b = 2 * tT * H * 4               # resident f32 accumulator
    inter = 3 * tT * eC * 4 + tT * H * 4  # y1/y3/g + expert_out (f32)
    return x_b + w_b + cw_b + out_b + inter


def _select_tiling(T, H, Ep, vmem_capacity):
    """Pick (token_tile, expert_dim_chunk) for this generation's VMEM."""
    budget = int(0.70 * vmem_capacity)
    max_tT = 512 if vmem_capacity >= 96 * 1024 * 1024 else 256
    T8 = _round_up(max(T, 1), 8)
    tT_cands = list(dict.fromkeys(
        min(t, T8) for t in (512, 256, 128, 64, 32, 16, 8) if t <= max_tT))
    if Ep % 128 == 0:
        ec_cands = list(dict.fromkeys(
            c for c in (Ep, 512, 384, 256, 128) if c <= Ep and Ep % c == 0))
    else:
        ec_cands = [Ep]
    for tT in tT_cands:        # biggest token tile first (amortize weight stream)
        for eC in ec_cands:    # biggest chunk that fits
            if _vmem_estimate(tT, H, eC) <= budget:
                return tT, eC
    return tT_cands[-1], ec_cands[-1]


# ---------------------------------------------------------------------------
# One-time weight preparation (hoist out of the forward path; cache result).
# ---------------------------------------------------------------------------
def prepare_moe_expert_weights(w1, w3, w2, dtype=jnp.bfloat16):
    """Transpose into (T,K)@(K,N) form, cast bf16, pad expert_dim. Call once."""
    num_experts, expert_dim, hidden = w1.shape
    Ep = _padded_expert_dim(expert_dim)
    w1t = jnp.swapaxes(w1, 1, 2).astype(dtype)   # (nE, H, E)
    w3t = jnp.swapaxes(w3, 1, 2).astype(dtype)   # (nE, H, E)
    w2t = jnp.swapaxes(w2, 1, 2).astype(dtype)   # (nE, E, H)
    if Ep > expert_dim:
        pad = Ep - expert_dim
        w1t = jnp.pad(w1t, ((0, 0), (0, 0), (0, pad)))
        w3t = jnp.pad(w3t, ((0, 0), (0, 0), (0, pad)))
        w2t = jnp.pad(w2t, ((0, 0), (0, pad), (0, 0)))
    return w1t, w3t, w2t


# ---------------------------------------------------------------------------
# Kernel
# ---------------------------------------------------------------------------
def _moe_expert_kernel(flags_ref, fe_ref, fc_ref,            # scalar prefetch
                       x_ref, w1_ref, w3_ref, w2_ref, cw_ref,  # inputs
                       out_ref,                              # output
                       *, num_experts):
    """Grid = (token_tile, expert, e_chunk). Accumulate weighted expert out."""
    del fe_ref, fc_ref  # only used by the index_maps (DMA elision)
    ti = pl.program_id(0)
    e = pl.program_id(1)
    ec = pl.program_id(2)

    @pl.when((e == 0) & (ec == 0))
    def _():
        out_ref[...] = jnp.zeros_like(out_ref)

    # Skip all MXU work if no token in this tile routed to this expert.
    # (Weight DMA for such steps is elided via the fetch-index index_maps.)
    @pl.when(flags_ref[ti * num_experts + e] != 0)
    def _():
        x = x_ref[...]                     # (tT, H)  bf16
        w1c = w1_ref[0]                    # (H, eC)  bf16  (chunk of w1[e].T)
        w3c = w3_ref[0]                    # (H, eC)  bf16
        w2c = w2_ref[0]                    # (eC, H)  bf16  (chunk of w2[e].T)

        y1 = jnp.dot(x, w1c, preferred_element_type=jnp.float32)   # (tT, eC)
        y3 = jnp.dot(x, w3c, preferred_element_type=jnp.float32)   # (tT, eC)
        # SiLU gating in f32 on VPU/EUP (v5e has no bf16 VPU/EUP).
        g = (y1 * jax.nn.sigmoid(y1)) * y3

        expert_out = jnp.dot(g.astype(jnp.bfloat16), w2c,
                             preferred_element_type=jnp.float32)   # (tT, H)

        # Dense-within-tile: unselected tokens have cw == 0; guard 0*inf.
        cw = cw_ref[0]                     # (tT, 1) f32
        out_ref[...] += jnp.where(cw != 0.0, cw * expert_out, 0.0)


def _build_fetch_indices(flags2d, nec):
    """Per-step (fetch_expert, fetch_chunk) that repeat the previous active
    block index for inactive (tile, expert) pairs -> Pallas elides those DMAs."""
    nt, nE = flags2d.shape
    active = flags2d != 0                                           # (nt, nE)
    e_ids = jnp.arange(nE, dtype=jnp.int32)
    marked = jnp.where(active, e_ids[None, :], -1)
    prev_active = lax.cummax(marked, axis=1)                        # (nt, nE)
    any_active = jnp.any(active, axis=1)
    first_active = jnp.where(any_active,
                             jnp.argmax(active, axis=1).astype(jnp.int32), 0)
    fe_e = jnp.where(active, e_ids[None, :],
                     jnp.where(prev_active >= 0, prev_active,
                               first_active[:, None])).astype(jnp.int32)
    fc_inactive = jnp.where(prev_active >= 0, nec - 1, 0).astype(jnp.int32)
    ec_ids = jnp.arange(nec, dtype=jnp.int32)
    fe = jnp.broadcast_to(fe_e[:, :, None], (nt, nE, nec))
    fc = jnp.where(active[:, :, None], ec_ids[None, None, :],
                   jnp.broadcast_to(fc_inactive[:, :, None], (nt, nE, nec)))
    return fe.reshape(-1).astype(jnp.int32), fc.reshape(-1).astype(jnp.int32)


def moe_expert_ffn_pallas(x_tok, prepared_weights, combine_weights, select_mask,
                          *, top_k):
    """x_tok: (T, H) f32; combine_weights/select_mask: (T, num_experts)."""
    w1t, w3t, w2t = prepared_weights                 # (nE,H,Ep) / (nE,H,Ep) / (nE,Ep,H)
    T, H = x_tok.shape
    num_experts, _, Ep = w1t.shape

    capacity = _vmem_capacity_bytes()
    tT, eC = _select_tiling(T, H, Ep, capacity)
    nec = Ep // eC

    Tp = _round_up(T, tT)
    num_tiles = Tp // tT
    pad = Tp - T

    x_p = jnp.pad(x_tok, ((0, pad), (0, 0))).astype(jnp.bfloat16)   # (Tp, H)
    cw_p = jnp.pad(combine_weights, ((0, pad), (0, 0)))             # (Tp, nE)
    sel_p = jnp.pad(select_mask, ((0, pad), (0, 0)))                # (Tp, nE)

    # Combine weights as ready-to-load per-expert (Tp, 1) columns, f32.
    cw_t = jnp.transpose(cw_p)[..., None].astype(jnp.float32)       # (nE, Tp, 1)

    # Scalar prefetch: activity flags + DMA-elision fetch indices (1D SMEM).
    flags2d = sel_p.reshape(num_tiles, tT, num_experts).any(axis=1)
    flags = flags2d.astype(jnp.int32).reshape(-1)                   # (nt*nE,)
    fe, fc = _build_fetch_indices(flags2d.astype(jnp.int32), nec)   # (nt*nE*nec,)

    # VMEM limit: include intermediates, leave headroom below physical capacity.
    est = _vmem_estimate(tT, H, eC)
    vmem_limit = int(min(0.85 * capacity, max(32 * 1024 * 1024, 2 * est)))

    def step(ti, e, ec):
        return (ti * num_experts + e) * nec + ec

    cost = pl.CostEstimate(
        flops=int(6 * T * top_k * H * Ep),
        transcendentals=int(T * top_k * Ep),
        bytes_accessed=int(num_tiles * 3 * num_experts * H * Ep * 2
                           + Tp * H * 2 + Tp * H * 4 + num_experts * Tp * 4),
    )

    kernel = functools.partial(_moe_expert_kernel, num_experts=num_experts)

    out_p = pl.pallas_call(
        kernel,
        out_shape=jax.ShapeDtypeStruct((Tp, H), jnp.float32),
        grid_spec=pltpu.PrefetchScalarGridSpec(
            num_scalar_prefetch=3,
            grid=(num_tiles, num_experts, nec),       # reduction axes innermost
            in_specs=[
                pl.BlockSpec((tT, H),
                             lambda ti, e, ec, fl, fe, fc: (ti, 0)),          # x
                pl.BlockSpec((1, H, eC),
                             lambda ti, e, ec, fl, fe, fc:
                             (fe[step(ti, e, ec)], 0, fc[step(ti, e, ec)])),  # w1t
                pl.BlockSpec((1, H, eC),
                             lambda ti, e, ec, fl, fe, fc:
                             (fe[step(ti, e, ec)], 0, fc[step(ti, e, ec)])),  # w3t
                pl.BlockSpec((1, eC, H),
                             lambda ti, e, ec, fl, fe, fc:
                             (fe[step(ti, e, ec)], fc[step(ti, e, ec)], 0)),  # w2t
                pl.BlockSpec((1, tT, 1),
                             lambda ti, e, ec, fl, fe, fc:
                             (fe[step(ti, e, ec)], ti, 0)),                   # cw
            ],
            out_specs=pl.BlockSpec((tT, H),
                                   lambda ti, e, ec, fl, fe, fc: (ti, 0)),
        ),
        compiler_params=pltpu.CompilerParams(
            dimension_semantics=("parallel", "arbitrary", "arbitrary"),
            vmem_limit_bytes=vmem_limit),
        cost_estimate=cost,
    )(flags, fe, fc, x_p, w1t, w3t, w2t, cw_t)

    return out_p[:T]


# ---------------------------------------------------------------------------
# Full module forward (router in plain JAX, expert FFN in Pallas)
# ---------------------------------------------------------------------------
@functools.partial(jax.jit, static_argnames=("top_k",))
def moe_feed_forward(x, router_w, w1t, w3t, w2t, top_k):
    """MOEFeedForwardAOQuantizable.forward (shared_expert=None, return_scores=False).
    w1t/w3t/w2t must come from prepare_moe_expert_weights (cached)."""
    batch_size = x.shape[0]
    hidden_dim = x.shape[-1]
    x_tok = x.reshape(-1, hidden_dim)                                # (T, H)
    num_experts = router_w.shape[0]

    # Router: linear -> softmax -> top-k -> renormalize.
    scores = jax.nn.softmax(x_tok @ router_w.T, axis=-1)
    top_vals, top_idx = lax.top_k(scores, top_k)                     # (T, k)
    top_vals = top_vals / jnp.sum(top_vals, axis=-1, keepdims=True)

    one_hot = jax.nn.one_hot(top_idx, num_experts, dtype=x_tok.dtype)  # (T, k, nE)
    combine_weights = jnp.sum(one_hot * top_vals[..., None], axis=1)   # (T, nE)
    select_mask = jnp.sum(one_hot, axis=1) > 0                         # (T, nE)

    out = moe_expert_ffn_pallas(x_tok, (w1t, w3t, w2t),
                                combine_weights, select_mask, top_k=top_k)
    return out.reshape(batch_size, -1, hidden_dim)


def _reference(x, router_w, w1, w3, w2, top_k):
    """Pure-JAX f32 reference matching the PyTorch module semantics."""
    batch_size = x.shape[0]
    hidden_dim = x.shape[-1]
    x_tok = x.reshape(-1, hidden_dim)
    scores = jax.nn.softmax(x_tok @ router_w.T, axis=-1)
    top_vals, top_idx = lax.top_k(scores, top_k)
    top_vals = top_vals / jnp.sum(top_vals, axis=-1, keepdims=True)
    num_experts = router_w.shape[0]
    cw = jnp.sum(jax.nn.one_hot(top_idx, num_experts) * top_vals[..., None], axis=1)
    out = jnp.zeros_like(x_tok)
    for e in range(num_experts):
        y1 = jax.nn.silu(x_tok @ w1[e].T)
        y3 = x_tok @ w3[e].T
        eo = (y1 * y3) @ w2[e].T
        out = out + cw[:, e:e + 1] * eo
    return out.reshape(batch_size, -1, hidden_dim)


if __name__ == "__main__":
    # Small, module-consistent shapes.
    batch, seq = 2, 8
    hidden_dim, expert_dim = 32, 64
    num_experts, top_k = 8, 2

    key = jax.random.PRNGKey(0)
    kx, kr, k1, k2, k3 = jax.random.split(key, 5)

    x = jax.random.normal(kx, (batch, seq, hidden_dim), dtype=jnp.float32)
    router_w = 0.1 * jax.random.normal(kr, (num_experts, hidden_dim), dtype=jnp.float32)
    w1 = 0.05 * jax.random.normal(k1, (num_experts, expert_dim, hidden_dim), dtype=jnp.float32)
    w2 = 0.05 * jax.random.normal(k2, (num_experts, hidden_dim, expert_dim), dtype=jnp.float32)
    w3 = 0.05 * jax.random.normal(k3, (num_experts, expert_dim, hidden_dim), dtype=jnp.float32)

    # One-time weight prep (would be cached alongside the module's weights).
    w1t, w3t, w2t = prepare_moe_expert_weights(w1, w3, w2)
    w1t, w3t, w2t = jax.block_until_ready((w1t, w3t, w2t))

    out = moe_feed_forward(x, router_w, w1t, w3t, w2t, top_k)
    out = jax.block_until_ready(out)

    ref = _reference(x, router_w, w1, w3, w2, top_k)
    assert out.shape == (batch, seq, hidden_dim)
    # bf16 MXU operands with f32 accumulation -> relaxed tolerance vs f32 ref.
    assert jnp.allclose(out, ref, atol=2e-2, rtol=2e-2), "mismatch vs reference"

    print("KERNEL_OK")
</pallas_src>

<mosaic_0001>
module attributes {stable_mosaic.version = 11 : i64} {
  func.func @_moe_expert_kernel(%arg0: i32, %arg1: i32, %arg2: i32, %arg3: memref<8xi32, #tpu.memory_space<smem>>, %arg4: memref<8xi32, #tpu.memory_space<smem>>, %arg5: memref<8xi32, #tpu.memory_space<smem>>, %arg6: memref<16x32xbf16, #tpu.memory_space<vmem>>, %arg7: memref<1x32x64xbf16, #tpu.memory_space<vmem>>, %arg8: memref<1x32x64xbf16, #tpu.memory_space<vmem>>, %arg9: memref<1x64x32xbf16, #tpu.memory_space<vmem>>, %arg10: memref<1x16x1xf32, #tpu.memory_space<vmem>>, %arg11: memref<16x32xf32, #tpu.memory_space<vmem>>) attributes {dimension_semantics = [#tpu.dimension_semantics<parallel>, #tpu.dimension_semantics<arbitrary>, #tpu.dimension_semantics<arbitrary>], iteration_bounds = array<i64: 1, 8, 1>, scalar_prefetch = 3 : i64, scratch_operands = 0 : i64, tpu.core_type = #tpu.core_type<tc>, window_params = [{transform_indices = @transform_0, window_bounds = array<i64: 16, 32>}, {transform_indices = @transform_1, window_bounds = array<i64: 1, 32, 64>}, {transform_indices = @transform_2, window_bounds = array<i64: 1, 32, 64>}, {transform_indices = @transform_3, window_bounds = array<i64: 1, 64, 32>}, {transform_indices = @transform_4, window_bounds = array<i64: 1, 16, 1>}, {transform_indices = @transform_5, window_bounds = array<i64: 16, 32>}]} {
    %c0_i32 = arith.constant 0 : i32
    %0 = arith.cmpi eq, %arg1, %c0_i32 : i32
    %c0_i32_0 = arith.constant 0 : i32
    %1 = arith.cmpi eq, %arg2, %c0_i32_0 : i32
    %2 = arith.andi %0, %1 : i1
    %3 = arith.extui %2 : i1 to i32
    %c0_i32_1 = arith.constant 0 : i32
    %4 = arith.cmpi ne, %3, %c0_i32_1 : i32
    scf.if %4 {
      %cst = arith.constant 0.000000e+00 : f32
      %12 = vector.broadcast %cst : f32 to vector<16x32xf32>
      %c0 = arith.constant 0 : index
      %c0_4 = arith.constant 0 : index
      %13 = vector.load %arg11[%c0, %c0_4] : memref<16x32xf32, #tpu.memory_space<vmem>>, vector<16x32xf32>
      tpu.vector_store %arg11[%c0, %c0_4], %12 {strides = array<i32>} : memref<16x32xf32, #tpu.memory_space<vmem>>, vector<16x32xf32>,
    } else {
    }
    %c8_i32 = arith.constant 8 : i32
    %5 = arith.muli %arg0, %c8_i32 : i32
    %6 = arith.addi %5, %arg1 : i32
    %7 = arith.index_cast %6 : i32 to index
    %8 = memref.load %arg3[%7] : memref<8xi32, #tpu.memory_space<smem>>
    %c0_i32_2 = arith.constant 0 : i32
    %9 = arith.cmpi ne, %8, %c0_i32_2 : i32
    %10 = arith.extui %9 : i1 to i32
    %c0_i32_3 = arith.constant 0 : i32
    %11 = arith.cmpi ne, %10, %c0_i32_3 : i32
    scf.if %11 {
      %c0 = arith.constant 0 : index
      %c0_4 = arith.constant 0 : index
      %12 = vector.load %arg6[%c0, %c0_4] : memref<16x32xbf16, #tpu.memory_space<vmem>>, vector<16x32xbf16>
      %c0_5 = arith.constant 0 : index
      %c0_6 = arith.constant 0 : index
      %c0_7 = arith.constant 0 : index
      %13 = vector.load %arg7[%c0_5, %c0_6, %c0_7] : memref<1x32x64xbf16, #tpu.memory_space<vmem>>, vector<1x32x64xbf16>
      %14 = vector.shape_cast %13 : vector<1x32x64xbf16> to vector<32x64xbf16>
      %c0_8 = arith.constant 0 : index
      %c0_9 = arith.constant 0 : index
      %c0_10 = arith.constant 0 : index
      %15 = vector.load %arg8[%c0_8, %c0_9, %c0_10] : memref<1x32x64xbf16, #tpu.memory_space<vmem>>, vector<1x32x64xbf16>
      %16 = vector.shape_cast %15 : vector<1x32x64xbf16> to vector<32x64xbf16>
      %c0_11 = arith.constant 0 : index
      %c0_12 = arith.constant 0 : index
      %c0_13 = arith.constant 0 : index
      %17 = vector.load %arg9[%c0_11, %c0_12, %c0_13] : memref<1x64x32xbf16, #tpu.memory_space<vmem>>, vector<1x64x32xbf16>
      %18 = vector.shape_cast %17 : vector<1x64x32xbf16> to vector<64x32xbf16>
      %cst = arith.constant dense<0.000000e+00> : vector<16x64xf32>
      %19 = tpu.matmul %12, %14, %cst {dimension_numbers = #tpu.dot_dimension_numbers<[1], [0], [0], [1], [0, 0, 1, 1], [], []>} : vector<16x32xbf16>, vector<32x64xbf16>, vector<16x64xf32> -> vector<16x64xf32>
      %cst_14 = arith.constant dense<0.000000e+00> : vector<16x64xf32>
      %20 = tpu.matmul %12, %16, %cst_14 {dimension_numbers = #tpu.dot_dimension_numbers<[1], [0], [0], [1], [0, 0, 1, 1], [], []>} : vector<16x32xbf16>, vector<32x64xbf16>, vector<16x64xf32> -> vector<16x64xf32>
      %21 = arith.negf %19 : vector<16x64xf32>
      %22 = math.exp %21 : vector<16x64xf32>
      %cst_15 = arith.constant 1.000000e+00 : f32
      %23 = vector.broadcast %cst_15 : f32 to vector<16x64xf32>
      %24 = arith.addf %23, %22 : vector<16x64xf32>
      %25 = arith.divf %23, %24 : vector<16x64xf32>
      %26 = arith.mulf %19, %25 : vector<16x64xf32>
      %27 = arith.mulf %26, %20 : vector<16x64xf32>
      %28 = arith.truncf %27 : vector<16x64xf32> to vector<16x64xbf16>
      %cst_16 = arith.constant dense<0.000000e+00> : vector<16x32xf32>
      %29 = tpu.matmul %28, %18, %cst_16 {dimension_numbers = #tpu.dot_dimension_numbers<[1], [0], [0], [1], [0, 0, 1, 1], [], []>} : vector<16x64xbf16>, vector<64x32xbf16>, vector<16x32xf32> -> vector<16x32xf32>
      %c0_17 = arith.constant 0 : index
      %c0_18 = arith.constant 0 : index
      %c0_19 = arith.constant 0 : index
      %30 = vector.load %arg10[%c0_17, %c0_18, %c0_19] : memref<1x16x1xf32, #tpu.memory_space<vmem>>, vector<1x16x1xf32>
      %31 = vector.shape_cast %30 : vector<1x16x1xf32> to vector<16x1xf32>
      %c0_20 = arith.constant 0 : index
      %c0_21 = arith.constant 0 : index
      %32 = vector.load %arg11[%c0_20, %c0_21] : memref<16x32xf32, #tpu.memory_space<vmem>>, vector<16x32xf32>
      %cst_22 = arith.constant 0.000000e+00 : f32
      %33 = vector.broadcast %cst_22 : f32 to vector<16x1xf32>
      %34 = arith.cmpf one, %31, %33 : vector<16x1xf32>
      %35 = vector.broadcast %31 : vector<16x1xf32> to vector<16x32xf32>
      %36 = arith.mulf %35, %29 : vector<16x32xf32>
      %cst_23 = arith.constant 0.000000e+00 : f32
      %37 = vector.shape_cast %34 : vector<16x1xi1> to vector<16x1xi1>
      %38 = vector.broadcast %37 : vector<16x1xi1> to vector<16x32xi1>
      %39 = vector.broadcast %cst_23 : f32 to vector<16x32xf32>
      %40 = arith.select %38, %36, %39 : vector<16x32xi1>, vector<16x32xf32>
      %41 = arith.addf %32, %40 : vector<16x32xf32>
      %c0_24 = arith.constant 0 : index
      %c0_25 = arith.constant 0 : index
      %42 = vector.load %arg11[%c0_24, %c0_25] : memref<16x32xf32, #tpu.memory_space<vmem>>, vector<16x32xf32>
      tpu.vector_store %arg11[%c0_24, %c0_25], %41 {strides = array<i32>} : memref<16x32xf32, #tpu.memory_space<vmem>>, vector<16x32xf32>,
    } else {
    }
    return
  }
  func.func @transform_0(%arg0: i32, %arg1: i32, %arg2: i32, %arg3: memref<8xi32, #tpu.memory_space<smem>>, %arg4: memref<8xi32, #tpu.memory_space<smem>>, %arg5: memref<8xi32, #tpu.memory_space<smem>>) -> (i32, i32) {
    %c0_i32 = arith.constant 0 : i32
    %c0_i32_0 = arith.constant 0 : i32
    return %arg0, %c0_i32 : i32, i32
  }
  func.func @transform_1(%arg0: i32, %arg1: i32, %arg2: i32, %arg3: memref<8xi32, #tpu.memory_space<smem>>, %arg4: memref<8xi32, #tpu.memory_space<smem>>, %arg5: memref<8xi32, #tpu.memory_space<smem>>) -> (i32, i32, i32) {
    %c8_i32 = arith.constant 8 : i32
    %0 = arith.muli %arg0, %c8_i32 : i32
    %1 = arith.addi %0, %arg1 : i32
    %c1_i32 = arith.constant 1 : i32
    %2 = arith.muli %1, %c1_i32 : i32
    %3 = arith.addi %2, %arg2 : i32
    %4 = arith.index_cast %3 : i32 to index
    %5 = memref.load %arg4[%4] : memref<8xi32, #tpu.memory_space<smem>>
    %c8_i32_0 = arith.constant 8 : i32
    %6 = arith.muli %arg0, %c8_i32_0 : i32
    %7 = arith.addi %6, %arg1 : i32
    %c1_i32_1 = arith.constant 1 : i32
    %8 = arith.muli %7, %c1_i32_1 : i32
    %9 = arith.addi %8, %arg2 : i32
    %10 = arith.index_cast %9 : i32 to index
    %11 = memref.load %arg5[%10] : memref<8xi32, #tpu.memory_space<smem>>
    %c0_i32 = arith.constant 0 : i32
    %c0_i32_2 = arith.constant 0 : i32
    return %5, %c0_i32, %11 : i32, i32, i32
  }
  func.func @transform_2(%arg0: i32, %arg1: i32, %arg2: i32, %arg3: memref<8xi32, #tpu.memory_space<smem>>, %arg4: memref<8xi32, #tpu.memory_space<smem>>, %arg5: memref<8xi32, #tpu.memory_space<smem>>) -> (i32, i32, i32) {
    %c8_i32 = arith.constant 8 : i32
    %0 = arith.muli %arg0, %c8_i32 : i32
    %1 = arith.addi %0, %arg1 : i32
    %c1_i32 = arith.constant 1 : i32
    %2 = arith.muli %1, %c1_i32 : i32
    %3 = arith.addi %2, %arg2 : i32
    %4 = arith.index_cast %3 : i32 to index
    %5 = memref.load %arg4[%4] : memref<8xi32, #tpu.memory_space<smem>>
    %c8_i32_0 = arith.constant 8 : i32
    %6 = arith.muli %arg0, %c8_i32_0 : i32
    %7 = arith.addi %6, %arg1 : i32
    %c1_i32_1 = arith.constant 1 : i32
    %8 = arith.muli %7, %c1_i32_1 : i32
    %9 = arith.addi %8, %arg2 : i32
    %10 = arith.index_cast %9 : i32 to index
    %11 = memref.load %arg5[%10] : memref<8xi32, #tpu.memory_space<smem>>
    %c0_i32 = arith.constant 0 : i32
    %c0_i32_2 = arith.constant 0 : i32
    return %5, %c0_i32, %11 : i32, i32, i32
  }
  func.func @transform_3(%arg0: i32, %arg1: i32, %arg2: i32, %arg3: memref<8xi32, #tpu.memory_space<smem>>, %arg4: memref<8xi32, #tpu.memory_space<smem>>, %arg5: memref<8xi32, #tpu.memory_space<smem>>) -> (i32, i32, i32) {
    %c8_i32 = arith.constant 8 : i32
    %0 = arith.muli %arg0, %c8_i32 : i32
    %1 = arith.addi %0, %arg1 : i32
    %c1_i32 = arith.constant 1 : i32
    %2 = arith.muli %1, %c1_i32 : i32
    %3 = arith.addi %2, %arg2 : i32
    %4 = arith.index_cast %3 : i32 to index
    %5 = memref.load %arg4[%4] : memref<8xi32, #tpu.memory_space<smem>>
    %c8_i32_0 = arith.constant 8 : i32
    %6 = arith.muli %arg0, %c8_i32_0 : i32
    %7 = arith.addi %6, %arg1 : i32
    %c1_i32_1 = arith.constant 1 : i32
    %8 = arith.muli %7, %c1_i32_1 : i32
    %9 = arith.addi %8, %arg2 : i32
    %10 = arith.index_cast %9 : i32 to index
    %11 = memref.load %arg5[%10] : memref<8xi32, #tpu.memory_space<smem>>
    %c0_i32 = arith.constant 0 : i32
    %c0_i32_2 = arith.constant 0 : i32
    return %5, %11, %c0_i32 : i32, i32, i32
  }
  func.func @transform_4(%arg0: i32, %arg1: i32, %arg2: i32, %arg3: memref<8xi32, #tpu.memory_space<smem>>, %arg4: memref<8xi32, #tpu.memory_space<smem>>, %arg5: memref<8xi32, #tpu.memory_space<smem>>) -> (i32, i32, i32) {
    %c8_i32 = arith.constant 8 : i32
    %0 = arith.muli %arg0, %c8_i32 : i32
    %1 = arith.addi %0, %arg1 : i32
    %c1_i32 = arith.constant 1 : i32
    %2 = arith.muli %1, %c1_i32 : i32
    %3 = arith.addi %2, %arg2 : i32
    %4 = arith.index_cast %3 : i32 to index
    %5 = memref.load %arg4[%4] : memref<8xi32, #tpu.memory_space<smem>>
    %c0_i32 = arith.constant 0 : i32
    %c0_i32_0 = arith.constant 0 : i32
    return %5, %arg0, %c0_i32 : i32, i32, i32
  }
  func.func @transform_5(%arg0: i32, %arg1: i32, %arg2: i32, %arg3: memref<8xi32, #tpu.memory_space<smem>>, %arg4: memref<8xi32, #tpu.memory_space<smem>>, %arg5: memref<8xi32, #tpu.memory_space<smem>>) -> (i32, i32) {
    %c0_i32 = arith.constant 0 : i32
    %c0_i32_0 = arith.constant 0 : i32
    return %arg0, %c0_i32 : i32, i32
  }
}

</mosaic_0001>

<bundles_post_ra>
// kernel: moe_feed_forward.1
= control target key start
LH: loop header
LB: loop body
LE: loop exit
PB: predicated region body
PF: predicated region fallthrough
CT: control target
= control target key end

     0   :  { %s1328_s0 = inlined_call_operand.vmem [shape: s32[8], index: 0, kind: input, shape index: {}]   ;;  %s1329_s3 = inlined_call_operand.vmem [shape: bf16[16,32], index: 3, kind: input, shape index: {}]   ;;  %s1330_s4 = inlined_call_operand.vmem [shape: bf16[8,32,64], index: 4, kind: input, shape index: {}]   ;;  %s1331_s5 = inlined_call_operand.vmem [shape: bf16[8,32,64], index: 5, kind: input, shape index: {}]   ;;  %s1332_s6 = inlined_call_operand.vmem [shape: bf16[8,64,32], index: 6, kind: input, shape index: {}]   ;;  %s1333_s7 = inlined_call_operand.vmem [shape: f32[8,16,1], index: 7, kind: input, shape index: {}]   ;;  %s1334_s8 = inlined_call_operand.hbm [shape: f32[16,32], index: 8, kind: output, shape index: {}]   ;;  %s1335_s1 = inlined_call_operand.vmem [shape: s32[8], index: 1, kind: input, shape index: {}]   ;;  %s1336_s2 = inlined_call_operand.vmem [shape: s32[8], index: 2, kind: input, shape index: {}]  }
   0x1   :  { %s13_s29 = sshll.u32 %s1328_s0, 4  ;;  %s17_s10 = sshll.u32 %s1335_s1, 4  ;;  %s14_s29 = int_to_ptr.vmem [resolvable:$true] %s13_s29  ;;  %s18_s10 = int_to_ptr.vmem [resolvable:$true] %s17_s10 }
   0x2   :  { %s1066_s11 = scalar_lea.vmem %s14_s29, 16  ;;  %p1071_p1 = scmp.lt.s32.totalorder %s14_s29, %s14_s29 }
   0x3   :  { %p1067_p0 = scmp.ne.s32.totalorder %s14_s29, %s1066_s11  ;;  %p1072_p2 = scmp.lt.s32.totalorder %s1066_s11, %s1066_s11 }
   0x5   :  { %p1073_p3 = por %p1072_p2, %p1071_p1 }
   0x7   :  { %p1074_p4 = pnand %p1073_p3, %p1067_p0 }
   0x9   :  { %1077 = shalt.err (!%p1074_p4)  }
   0xa   :  { %s1158_s12 = smov [#allocation3]   ;;  %s1078_s13 = scalar_lea.vmem %s18_s10, 16 }
   0xb   :  { %16 = dma.vmem_to_smem %s14_s29, 16, %s1158_s12, [#allocation2] }
   0xc   :  { %p1079_p5 = scmp.ne.s32.totalorder %s18_s10, %s1078_s13  ;;  %p1083_p6 = scmp.lt.s32.totalorder %s18_s10, %s18_s10 }
   0xd   :  { %p1084_p7 = scmp.lt.s32.totalorder %s1078_s13, %s1078_s13 }
   0xf   :  { %p1085_p8 = por %p1084_p7, %p1083_p6 }
  0x11   :  { %p1086_p9 = pnand %p1085_p8, %p1079_p5 }
  0x13   :  { %1089 = shalt.err (!%p1086_p9)  }
  0x14   :  { %s1159_s0 = smov [#allocation4]   ;;  %s21_s15 = sshll.u32 %s1336_s2, 4  ;;  %s22_s15 = int_to_ptr.vmem [resolvable:$true] %s21_s15 }
  0x15   :  { %20 = dma.vmem_to_smem %s18_s10, 16, %s1159_s0, [#allocation2] }
  0x16   :  { %s1090_s16 = scalar_lea.vmem %s22_s15, 16  ;;  %p1095_p11 = scmp.lt.s32.totalorder %s22_s15, %s22_s15 }
  0x17   :  { %p1091_p10 = scmp.ne.s32.totalorder %s22_s15, %s1090_s16  ;;  %p1096_p12 = scmp.lt.s32.totalorder %s1090_s16, %s1090_s16 }
  0x19   :  { %p1097_p13 = por %p1096_p12, %p1095_p11 }
  0x1b   :  { %p1098_p0 = pnand %p1097_p13, %p1091_p10 }
  0x1d   :  { %1101 = shalt.err (!%p1098_p0)  }
  0x1e   :  { %s1160_s17 = smov [#allocation5]  }
  0x1f   :  { %24 = dma.vmem_to_smem %s22_s15, 16, %s1160_s17, [#allocation2] }
  0x20   :  { %1140 = dma.done.wait [#allocation2], 48 }
  0x21   :  { %1141 = vsyncadd [#allocation2], 4294967248 }
  0x22   :  { %26 = sfence }
  0x23   :  { %27 = vsyncpa [#allocation7], 0  ;;  %s1222_s18 = smov 0   ;;  %s1224_s19 = smov 0  }
  0x24   :  { %s1226_s20 = smov 0  }
  0x25 LB: > { %s932_s2 = sadd.s32 4294967295, %s1156_s20   ;;  %s48_s21 = sadd.s32 1, %s1152_s19  ;;  %s1156_s20 = sphi %s1226_s20, %s33_s20   ;;  %s1152_s19 = sphi %s1224_s19, %s1339_s19   ;;  %s1148_s18 = sphi %s1222_s18, %s1338_s18  }
  0x26   : > { %p50_p1 = scmp.ge.s32.totalorder %s48_s21, 8  ;;  %p936_p2 = scmp.ge.s32.totalorder %s1156_s20, 1 }
  0x27   : > { %p365_p3 = scmp.lt.s32.totalorder %s1156_s20, 9 }
  0x28   : > { %s1341_s21 = smov (%p50_p1, %s48_s21), 0 }
  0x29   : > { %p366_p4 = pnand %p936_p2, %p365_p3 }
  0x2a   : > { %s450_s22 = sld [smem:[#allocation4 + %s1148_s18]] (!%p366_p4)  ;;  %p523_p5 = scmp.eq.s32.totalorder (!%p366_p4), %s1148_s18, 0 }
  0x2b   : > { %369 = sbr.rel (%p366_p4) target bundleno = 576 (0x240), region = 40  ;;  %s451_s23 = sld [smem:[#allocation5 + %s1148_s18]] (!%p366_p4) }
  0x2c   : > { %s468_s24 = sld [smem:[#allocation4 + %s1148_s18]] (!%p366_p4) }
  0x2d   : > { %s469_s25 = sld [smem:[#allocation5 + %s1148_s18]] (!%p366_p4) }
  0x2e   : > { %s487_s26 = sld [smem:[#allocation5 + %s1148_s18]] (!%p366_p4) }
  0x2f   : > { %s486_s27 = sld [smem:[#allocation4 + %s1148_s18]] (!%p366_p4) }
  0x30   : > { %p452_p6 = scmp.lt.s32.totalorder (!%p366_p4), %s450_s22, 7  ;;  %s506_s9 = sld [smem:[#allocation4 + %s1148_s18]] (!%p366_p4) }
  0x31   : > { %p454_p7 = scmp.lt.s32.totalorder (!%p366_p4), %s451_s23, 0 }
  0x32   : > { %s1343_s22 = smov (!%p452_p6, %s450_s22), 7  ;;  %p470_p8 = scmp.lt.s32.totalorder %s468_s24, 7  ;;  %vm529_vm0 = vcmask (%p523_p5), 261120   ;;  %v1161_v0 = vmov (%p523_p5), 0.0  }
  0x33   : > { %s1345_s23 = smov (!%p454_p7, %s451_s23), 0  ;;  %s937_s28 = sshll.u32 %s1343_s22, 2  ;;  %530 = vst.msk [vmem:[#allocation6] sm:$0xff] (%p523_p5), %vm529_vm0, %v1161_v0  ;;  %531 = vst.msk [vmem:[#allocation6 + $0x8] sm:$0xff] (%p523_p5), %vm529_vm0, %v1161_v0 }
  0x34   : > { %s457_s29 = sadd.s32 %s937_s28, %s1345_s23  ;;  %p472_p9 = scmp.lt.s32.totalorder %s469_s25, 0 }
  0x35   : > { %s938_s30 = sshll.u32 %s457_s29, 2  ;;  %s941_s13 = sshll.u32 %s487_s26, 3 }
  0x36   : > { %s1254_s12 = scalar_lea.vmem %s1330_s4, %s938_s30  ;;  %s1347_s24 = smov (!%p470_p8, %s468_s24), 7 }
  0x37   : > { %s1349_s25 = smov (!%p472_p9, %s469_s25), 0  ;;  %s939_s0 = sshll.u32 %s1347_s24, 2 }
  0x38   : > { %p489_p10 = scmp.lt.s32.totalorder %s486_s27, 7  ;;  %s475_s1 = sadd.s32 %s939_s0, %s1349_s25 }
  0x39   : > { %p491_p11 = scmp.lt.s32.totalorder %s941_s13, 7  ;;  %s940_s14 = sshll.u32 %s475_s1, 2 }
  0x3a   : > { %s1259_s17 = scalar_lea.vmem %s1331_s5, %s940_s14  ;;  %s1351_s27 = smov (!%p489_p10, %s486_s27), 7 }
  0x3b   : > { %s1353_s13 = smov (!%p491_p11, %s941_s13), 7  ;;  %s942_s22 = sshll.u32 %s1351_s27, 3 }
  0x3c   : > { %p508_p12 = scmp.lt.s32.totalorder %s506_s9, 7  ;;  %s494_s23 = sadd.s32 %s942_s22, %s1353_s13 }
  0x3d   : > { %s943_s28 = sshll.u32 %s494_s23, 2  ;;  %528 = sbr.rel (!%p523_p5) target bundleno = 68 (0x44), region = 44 }
  0x3e   : > { %s1264_s30 = scalar_lea.vmem %s1332_s6, %s943_s28  ;;  %s1355_s9 = smov (!%p508_p12, %s506_s9), 7 }
  0x3f   : > { %s966_s24 = sshll.u32 %s1355_s9, 4 }
  0x40   : > { %s1269_s11 = scalar_lea.vmem %s1333_s7, %s966_s24 }
  0x44 PF: > { %s534_s27 = sld [smem:[#allocation3 + %s1148_s18]] }
  0x4a   : > { %p947_p13 = scmp.eq.s32.totalorder %s534_s27, 0 }
  0x4b   : > { %v1049_v1 = vld [vmem:[%s1254_s12] sm:$0xff] (!%p947_p13)   ;;  %v1162_v2 = vmov (!%p947_p13), 0.0   ;;  %v1050_v3 = vld [vmem:[%s1254_s12 + $0x8] sm:$0xff] (!%p947_p13)   ;;  %vm1163_vm1 = vmmov (!%p947_p13), 0   ;;  %vm574_vm2 = vcmask (!%p947_p13), 261120   ;;  %v1056_v9 = vld [vmem:[%s1264_s30 + $0x10] sm:$0xff] (!%p947_p13)  }
  0x4c   : > { %538 = sbr.rel (%p947_p13) target bundleno = 550 (0x226), region = 48  ;;  %979 = vmatprep.subr.bf16.mxu1 (!%p947_p13), %v1162_v2  ;;  %995 = vmatprep.subr.bf16.mxu0 (!%p947_p13), %v1162_v2  ;;  %v1051_v4 = vld [vmem:[%s1329_s3] sm:$0xff] (!%p947_p13)   ;;  %v1053_v6 = vld [vmem:[%s1259_s17 + $0x8] sm:$0xff] (!%p947_p13)   ;;  %v1057_v10 = vld [vmem:[%s1264_s30 + $0x18] sm:$0xff] (!%p947_p13)   ;;  %v1164_v13 = vmov (!%p947_p13), 0   ;;  %vm713_vm5 = vcmask (!%p947_p13), 523264  }
  0x4d   : > { %980 = vmatpush3.bf16.msra.mxu1 (!%p947_p13), %v1049_v1  ;;  %983 = vmatprep.mubr.msk.bf16.mxu1 (!%p947_p13), %vm1163_vm1, %v1162_v2  ;;  %v1052_v5 = vld [vmem:[%s1259_s17] sm:$0xff] (!%p947_p13)   ;;  %v1055_v8 = vld [vmem:[%s1264_s30 + $0x8] sm:$0xff] (!%p947_p13)  }
  0x4e   : > { %981 = vmatprep.subr.bf16.mxu1 (!%p947_p13), %v1162_v2  ;;  %1003 = vmatprep.mubr.msk.bf16.mxu0 (!%p947_p13), %vm1163_vm1, %v1162_v2  ;;  %v1054_v7 = vld [vmem:[%s1264_s30] sm:$0xff] (!%p947_p13)   ;;  %v759_v12 = vld [vmem:[%s1269_s11 + $0x8] sm:$0xff] (!%p947_p13) }
  0x4f   : > { %996 = vmatpush3.bf16.msra.mxu0 (!%p947_p13), %v1054_v7  ;;  %v758_v11 = vld [vmem:[%s1269_s11] sm:$0xff] (!%p947_p13)  ;;  %1047 = vset.pattern.permute.xlu0 (!%p947_p13), %v1164_v13  ;;  %vm763_vm4 = vcmp.ne.f32.partialorder (!%p947_p13), %v759_v12, 0.0  ;;  %v761_v47 = vld [vmem:[#allocation6 + $0x8] sm:$0xff] (!%p947_p13) }
  0x50   : > { %997 = vmatprep.subr.bf16.mxu0 (!%p947_p13), %v1162_v2  ;;  %1048 = vset.pattern.permute.xlu1 (!%p947_p13), %v1164_v13  ;;  %vm762_vm3 = vcmp.ne.f32.partialorder (!%p947_p13), %v758_v11, 0.0  ;;  %v777_v15 = vsel (!%p947_p13), %vm763_vm4, 1, %v1164_v13  ;;  %v760_v41 = vld [vmem:[#allocation6] sm:$0xff] (!%p947_p13) }
  0x51   : > { %982 = vmatpush3.bf16.msra.mxu1 (!%p947_p13), %v1050_v3  ;;  %766 = vperm.xlu0 (!%p947_p13), %1047, %v758_v11   ;;  %v776_v14 = vsel (!%p947_p13), %vm762_vm3, 1, %v1164_v13 }
  0x52   : > { %987 = vmatprep.subr.bf16.mxu1 (!%p947_p13), %v1162_v2  ;;  %779 = vperm.xlu1 (!%p947_p13), %1048, %v776_v14  }
  0x53   : > { %998 = vmatpush3.bf16.msra.mxu0 %v1055_v8 }
  0x54   : > { %984 = vmatmul.mubr.msk.bf16.vlgmr.msra.gmra.mrb[0].mxu1 %vm574_vm2, %v1051_v4  ;;  %999 = vmatprep.subr.bf16.mxu0 %v1162_v2 }
  0x55   : > { %988 = vmatpush3.bf16.msra.mxu1 %v1052_v5  ;;  %991 = vmatprep.mubr.msk.bf16.mxu1 %vm1163_vm1, %v1162_v2 }
  0x56   : > { %989 = vmatprep.subr.bf16.mxu1 %v1162_v2  ;;  %771 = vperm.xlu0 %1047, %v759_v12  }
  0x57   : > { %1000 = vmatpush3.bf16.msra.mxu0 %v1056_v9  ;;  %782 = vperm.xlu1 %1048, %v777_v15  }
  0x58   : > { %1001 = vmatprep.subr.bf16.mxu0 %v1162_v2 }
  0x59   : > { %990 = vmatpush3.bf16.msra.mxu1 %v1053_v6 }
  0x5b   : > { %1002 = vmatpush3.bf16.msra.mxu0 %v1057_v10 }
  0x5c   : > { %992 = vmatmul.mubr.msk.bf16.vlgmr.msra.gmra.mrb[4].mxu1 %vm574_vm2, %v1051_v4 }
  0xd0   : > { %v767_v38 = vpop.permute.xlu0 %766 }
  0xd1   : > { %v780_v37 = vpop.permute.xlu1 %779 }
  0xd2   : > { %vm784_vm6 = vcmp.eq.s32.totalorder %v780_v37, 1 }
  0xd5   : > { %v772_v44 = vpop.permute.xlu0 %771 }
  0xd6   : > { %v783_v40 = vpop.permute.xlu1 %782 }
  0xd7   : > { %vm785_vm7 = vcmp.eq.s32.totalorder %v783_v40, 1 }
 0x127   : > { %v612_v16 = vpop.f32.mrb[0].mxu1 }
 0x128   : > { %v955_v17 = vmul.f32 -1.442695, %v612_v16  ;;  %v985_v18 = vpop.f32.mrb[1].mxu1 }
 0x129   : > { %v615_v19 = vpop.f32.mrb[2].mxu1 }
 0x12a   : > { %1058 = vpow2.f32 %v955_v17  ;;  %v956_v20 = vmul.f32 -1.442695, %v615_v19  ;;  %v986_v21 = vpop.f32.mrb[3].mxu1 }
 0x12c   : > { %1060 = vpow2.f32 %v956_v20 }
 0x12f   : > { %v665_v22 = vpop.f32.mrb[4].mxu1 }
 0x130   : > { %v993_v23 = vpop.f32.mrb[5].mxu1 }
 0x131   : > { %v668_v24 = vpop.f32.mrb[6].mxu1 }
 0x132   : > { %v994_v25 = vpop.f32.mrb[7].mxu1 }
 0x134   : > { %v1059_v26 = vpop.eup %1058 }
 0x135   : > { %v678_v27 = vadd.f32 1.0, %v1059_v26 }
 0x136   : > { %v1061_v28 = vpop.eup %1060 }
 0x137   : > { %1062 = vrcp.f32 %v678_v27  ;;  %v679_v29 = vadd.f32 1.0, %v1061_v28 }
 0x139   : > { %1064 = vrcp.f32 %v679_v29 }
 0x141   : > { %v1063_v30 = vpop.eup %1062 }
 0x142   : > { %v684_v31 = vmul.f32 %v1063_v30, %v612_v16 }
 0x143   : > { %v1065_v32 = vpop.eup %1064 }
 0x144   : > { %v685_v33 = vmul.f32 %v1065_v32, %v615_v19  ;;  %v686_v34 = vmul.f32 %v684_v31, %v665_v22 }
 0x146   : > { %v687_v35 = vmul.f32 %v685_v33, %v668_v24 }
 0x148   : > { %v688_v36 = vpack.c.bf16 %v687_v35, %v686_v34 }
 0x14a   : > { %1004 = vmatmul.mubr.msk.bf16.vlgmr.msra.gmra.mrb[0].mxu0 %vm713_vm5, %v688_v36 }
 0x21d   : > { %v751_v39 = vpop.f32.mrb[0].mxu0 }
 0x21e   : > { %v774_v42 = vmul.f32 %v767_v38, %v751_v39  ;;  %v1005_v43 = vpop.f32.mrb[1].mxu0 }
 0x21f   : > { %v754_v45 = vpop.f32.mrb[2].mxu0 }
 0x220   : > { %v786_v46 = vsel %vm784_vm6, %v774_v42, 0.0  ;;  %v775_v48 = vmul.f32 %v772_v44, %v754_v45  ;;  %v1006_v49 = vpop.f32.mrb[3].mxu0 }
 0x221   : > { %v788_v50 = vadd.f32 %v786_v46, %v760_v41 }
 0x222   : > { %v787_v51 = vsel %vm785_vm7, %v775_v48, 0.0 }
 0x223   : > { %790 = vst.msk [vmem:[#allocation6] sm:$0xff] %vm574_vm2, %v788_v50  ;;  %v789_v52 = vadd.f32 %v787_v51, %v761_v47 }
 0x225   : > { %791 = vst.msk [vmem:[#allocation6 + $0x8] sm:$0xff] %vm574_vm2, %v789_v52 }
 0x226 PF: > { %p1293_p0 = scmp.eq.s32.totalorder %s932_s2, 7  ;;  %s1165_s12 = smov [#allocation6]  }
 0x227   : > { %s801_s0 = sshll.u32 %s1165_s12, 4  ;;  %s802_s0 = int_to_ptr.vmem [resolvable:$true] %s801_s0 }
 0x228   : > { %s1102_s1 = scalar_lea.vmem %s802_s0, 256  ;;  %p1109_p4 = scmp.lt.s32.totalorder %s802_s0, %s802_s0 }
 0x229   : > { %p1103_p1 = scmp.ne.s32.totalorder %s802_s0, %s1102_s1  ;;  %p1110_p5 = scmp.lt.s32.totalorder %s1102_s1, %s1102_s1 }
 0x22b   : > { %p1104_p2 = pnand %p1103_p1, %p1293_p0  ;;  %p1111_p6 = por %p1110_p5, %p1109_p4 }
 0x22d   : > { %p1105_p3 = pneg %p1104_p2 }
 0x22f   : > { %p1112_p7 = pnand %p1111_p6, %p1105_p3 }
 0x231   : > { %1115 = shalt.err (!%p1112_p7)
}
 0x232   : > { %s1116_s2 = scalar_lea.hbm %s1334_s8, 256 }
 0x233   : > { %p1117_p8 = scmp.ne.s32.totalorder %s1334_s8, %s1116_s2  ;;  %p1122_p11 = scmp.lt.u32.totalorder %s1116_s2, %s1334_s8 }
 0x235   : > { %p1118_p9 = pnand %p1117_p8, %p1293_p0 }
 0x237   : > { %p1119_p10 = pneg %p1118_p9 }
 0x239   : > { %p1124_p12 = pnand %p1122_p11, %p1119_p10 }
 0x23b   : > { %1127 = shalt.err (!%p1124_p12)
}
 0x23c   : > { %s1166_s28 = smov 128   ;;  %s1167_s29 = smov 8  }
 0x23d   : > { %1008 = dma.vmem_to_hbm [thread:$0]  (%p1293_p0), %s802_s0, 256, %s1334_s8, [#allocation7], %s1166_s28, %s1166_s28, %s1167_s29  }
 0x23e   : > { %1143 = dma.done.wait (%p1293_p0), [#allocation7], 256  }
 0x23f   : > { %1145 = vsyncadd (%p1293_p0), [#allocation7], 4294967040 }
 0x240 PF: > { %s33_s20 = sadd.s32 1, %s1156_s20   ;;  %s1338_s18 = smov %s1152_s19 }
 0x241   : > { %p30_p13 = scmp.ge.s32.totalorder %s33_s20, 10   ;;  %s1339_s19 = smov %s1341_s21 }
 0x243   :  { %32 = sbr.rel (!%p30_p13) target bundleno = 37 (0x25), region = 88 }
 0x24a   :  { %817 = vsyncpa [#allocation7], 1 }
 0x24b   :  { %819 = vsyncpa [#allocation7 + $0x1], 1 }

</bundles_post_ra>
